<compile_context>
chip_gen: v5e
topology: v5e:2x2
jax: 0.10.0
libtpu: 0.0.40
codegen_flags: <defaults>
</compile_context>

<pallas_src>
import functools

import jax
import jax.numpy as jnp
from jax.experimental import pallas as pl
from jax.experimental.pallas import tpu as pltpu

LN_EPS = 1e-5
OUT_ROWS = 8          # sublane-aligned output rows: [policy(out_dim) | value | zero pad]
SLAB_LANES = 128      # param slab lane width (one full vreg tile wide)
MIN_BLOCK_B = 128     # lane tile must be a multiple of 128
MAX_BLOCK_B = 8192    # amortizes ~0.35 us/grid-step overhead; tiles stay < 1 MiB


def _fused_policy_kernel(xt_ref, w1t_ref, slab_ref, w2t_ref, out_ref, *, hidden, out_dim):
    xt = xt_ref[...]                                  # (in_dim, bb)   f32
    w1t = w1t_ref[...]                                # (2H, in_dim)
    slab = slab_ref[...]                              # (2H, 128)
    w2t = w2t_ref[...]                                # (8, 2H)

    b1 = slab[:, 0:1]                                 # (2H, 1)
    gamma = slab[:, 1:2]
    beta = slab[:, 2:3]
    b2 = slab[:OUT_ROWS, 3:4]                         # (8, 1), zero beyond out_dim

    # ---- layer 1: both heads in a single MXU pass, batch on the lane axis ---
    h = jnp.dot(w1t, xt, preferred_element_type=jnp.float32) + b1     # (2H, bb)

    # ---- grouped LayerNorm over the feature (sublane) axis ------------------
    # Actor features are rows [0, H), critic features rows [H, 2H): static,
    # tile-aligned sublane slices (no lane masks needed in this layout).
    inv_h = 1.0 / hidden
    h_a = h[:hidden]                                  # (H, bb)
    h_c = h[hidden:]                                  # (H, bb)
    mu_a = jnp.sum(h_a, axis=0, keepdims=True) * inv_h
    mu_c = jnp.sum(h_c, axis=0, keepdims=True) * inv_h
    d_a = h_a - mu_a
    d_c = h_c - mu_c
    var_a = jnp.sum(d_a * d_a, axis=0, keepdims=True) * inv_h
    var_c = jnp.sum(d_c * d_c, axis=0, keepdims=True) * inv_h
    n_a = d_a * jax.lax.rsqrt(var_a + LN_EPS)
    n_c = d_c * jax.lax.rsqrt(var_c + LN_EPS)
    h = jnp.concatenate([n_a, n_c], axis=0) * gamma + beta            # (2H, bb)
    h = jnp.maximum(h, 0.0)                                           # ReLU
    # TODO(synk): Dropout is eval-mode identity; training-mode masking would
    # use pltpu.prng_seed / pltpu.prng_random_bits here.

    # ---- layer 2: block-diagonal fused weights -> (8, bb) slab --------------
    out = jnp.dot(w2t, h, preferred_element_type=jnp.float32) + b2    # (8, bb)

    # ---- softmax over the actor rows; value row passes through --------------
    logits = out[:out_dim]                                            # (out_dim, bb)
    m = jnp.max(logits, axis=0, keepdims=True)
    e = jnp.exp(logits - m)
    denom = jnp.sum(e, axis=0, keepdims=True)
    # approx=False keeps 1e-5 parity with the f32 reference; flip to approx=True
    # (free EUP vrcp) only if that tolerance is relaxed.
    probs = e * pl.reciprocal(denom, approx=False)

    out_ref[...] = jnp.concatenate([probs, out[out_dim:]], axis=0).astype(out_ref.dtype)


def pack_params(p, out_dim, out_rows=OUT_ROWS, slab_lanes=SLAB_LANES):
    """Host/trace-time packing of the 13 raw params into 3 dense, transposed operands."""
    in_dim, hidden = p["w1a"].shape
    h2 = 2 * hidden
    assert out_rows >= out_dim + 1 and h2 >= out_rows

    # Layer-1 weights, both heads stacked feature-major: (2H, in_dim).
    w1t = jnp.concatenate([p["w1a"], p["w1c"]], axis=1).T

    # Layer-2, block-diagonal in transposed form: (out_rows, 2H).
    w2t = jnp.zeros((out_rows, h2), jnp.float32)
    w2t = w2t.at[:out_dim, :hidden].set(p["w2a"].T)
    w2t = w2t.at[out_dim, hidden:].set(p["w2c"][:, 0])

    # Param slab (2H, 128): lane 0 = b1, 1 = gamma, 2 = beta, lane 3 rows [0,8) = b2.
    slab = jnp.zeros((h2, slab_lanes), jnp.float32)
    slab = slab.at[:, 0].set(jnp.concatenate([p["b1a"][0], p["b1c"][0]]))
    slab = slab.at[:, 1].set(jnp.concatenate([p["ga"][0], p["gc"][0]]))
    slab = slab.at[:, 2].set(jnp.concatenate([p["ba"][0], p["bc"][0]]))
    b2 = jnp.zeros((out_rows,), jnp.float32)
    b2 = b2.at[:out_dim].set(p["b2a"][0])
    b2 = b2.at[out_dim].set(p["b2c"][0, 0])
    slab = slab.at[:out_rows, 3].set(b2)

    return {"w1t": w1t, "w2t": w2t, "slab": slab,
            "in_dim": in_dim, "hidden": hidden,
            "out_dim": out_dim, "out_rows": out_rows}


def _choose_block_b(batch):
    if batch <= MIN_BLOCK_B:
        return MIN_BLOCK_B
    # Aim for >= 4 grid steps when the batch allows it (2 per TensorCore on
    # v7x megacore), lane tile a multiple of 128, capped at MAX_BLOCK_B.
    quarter = (batch // 4) // MIN_BLOCK_B * MIN_BLOCK_B
    return int(min(MAX_BLOCK_B, max(MIN_BLOCK_B, quarter)))


def policy_network_forward(x, packed, *, block_b=None):
    B, in_dim = x.shape
    assert in_dim == packed["in_dim"]
    hidden = packed["hidden"]
    out_dim = packed["out_dim"]
    out_rows = packed["out_rows"]
    w1t, w2t, slab = packed["w1t"], packed["w2t"], packed["slab"]

    if block_b is None:
        block_b = _choose_block_b(B)
    block_b = max(MIN_BLOCK_B, (block_b // MIN_BLOCK_B) * MIN_BLOCK_B)

    grid_b = pl.cdiv(B, block_b)
    b_pad = grid_b * block_b

    # Batch-on-lanes input: (in_dim, b_pad).  Zero padding keeps the padded
    # lanes finite through LN/exp; the wrapper slices them off below.
    xt = jnp.zeros((in_dim, b_pad), x.dtype).at[:, :B].set(x.T)

    kernel = functools.partial(_fused_policy_kernel, hidden=hidden, out_dim=out_dim)

    out = pl.pallas_call(
        kernel,
        grid=(grid_b,),
        in_specs=[
            pl.BlockSpec((in_dim, block_b), lambda i: (0, i)),   # x: tiled over batch lanes
            pl.BlockSpec(w1t.shape, lambda i: (0, 0)),           # weights replicated
            pl.BlockSpec(slab.shape, lambda i: (0, 0)),
            pl.BlockSpec(w2t.shape, lambda i: (0, 0)),
        ],
        out_specs=pl.BlockSpec((out_rows, block_b), lambda i: (0, i)),
        out_shape=jax.ShapeDtypeStruct((out_rows, b_pad), jnp.float32),
        compiler_params=pltpu.CompilerParams(dimension_semantics=("parallel",)),
    )(xt, w1t, slab, w2t)

    # Compact sublane-row slices (no 128-lane padded slab to re-read).
    policy = out[:out_dim, :B].T          # (B, out_dim)
    value = out[out_dim:out_dim + 1, :B].T  # (B, 1)
    return policy, value


def init_params(key, input_dim=8, hidden_dim=32, output_dim=4):
    """Deterministic PyTorch-style (uniform +-1/sqrt(fan_in)) init in f32."""
    ks = jax.random.split(key, 8)

    def lin(kw, kb, fan_in, fan_out):
        bound = 1.0 / jnp.sqrt(jnp.float32(fan_in))
        w = jax.random.uniform(kw, (fan_in, fan_out), jnp.float32, -bound, bound)
        b = jax.random.uniform(kb, (1, fan_out), jnp.float32, -bound, bound)
        return w, b

    w1a, b1a = lin(ks[0], ks[1], input_dim, hidden_dim)
    w2a, b2a = lin(ks[2], ks[3], hidden_dim, output_dim)
    w1c, b1c = lin(ks[4], ks[5], input_dim, hidden_dim)
    w2c, b2c = lin(ks[6], ks[7], hidden_dim, 1)
    return {
        "w1a": w1a, "b1a": b1a,
        "ga": jnp.ones((1, hidden_dim), jnp.float32),
        "ba": jnp.zeros((1, hidden_dim), jnp.float32),
        "w2a": w2a, "b2a": b2a,
        "w1c": w1c, "b1c": b1c,
        "gc": jnp.ones((1, hidden_dim), jnp.float32),
        "bc": jnp.zeros((1, hidden_dim), jnp.float32),
        "w2c": w2c, "b2c": b2c,
    }


def reference_forward(x, p):
    def head(x, w1, b1, g, b, w2, b2):
        h = x @ w1 + b1
        mu = h.mean(-1, keepdims=True)
        var = ((h - mu) ** 2).mean(-1, keepdims=True)
        h = (h - mu) / jnp.sqrt(var + LN_EPS) * g + b
        h = jnp.maximum(h, 0.0)
        return h @ w2 + b2

    logits = head(x, p["w1a"], p["b1a"], p["ga"], p["ba"], p["w2a"], p["b2a"])
    policy = jax.nn.softmax(logits, axis=-1)
    value = head(x, p["w1c"], p["b1c"], p["gc"], p["bc"], p["w2c"], p["b2c"])
    return policy, value


if __name__ == "__main__":
    key = jax.random.PRNGKey(0)
    k_param, k_x = jax.random.split(key)

    batch, input_dim, hidden_dim, output_dim = 8, 8, 32, 4
    params = init_params(k_param, input_dim, hidden_dim, output_dim)
    packed = pack_params(params, output_dim)
    x = jax.random.normal(k_x, (batch, input_dim), jnp.float32)

    policy, value = policy_network_forward(x, packed)
    jax.block_until_ready((policy, value))

    policy_ref, value_ref = reference_forward(x, params)
    assert policy.shape == (batch, output_dim) and value.shape == (batch, 1)
    assert jnp.allclose(policy, policy_ref, atol=1e-5, rtol=1e-5)
    assert jnp.allclose(value, value_ref, atol=1e-5, rtol=1e-5)
    assert jnp.allclose(jnp.sum(policy, axis=-1), 1.0, atol=1e-5)

    print("KERNEL_OK")
</pallas_src>

<mosaic_0001>
module attributes {stable_mosaic.version = 11 : i64} {
  func.func @_fused_policy_kernel(%arg0: i32, %arg1: memref<8x128xf32, #tpu.memory_space<vmem>>, %arg2: memref<64x8xf32, #tpu.memory_space<vmem>>, %arg3: memref<64x128xf32, #tpu.memory_space<vmem>>, %arg4: memref<8x64xf32, #tpu.memory_space<vmem>>, %arg5: memref<8x128xf32, #tpu.memory_space<vmem>>) attributes {dimension_semantics = [#tpu.dimension_semantics<parallel>], iteration_bounds = array<i64: 1>, scalar_prefetch = 0 : i64, scratch_operands = 0 : i64, tpu.core_type = #tpu.core_type<tc>, window_params = [{transform_indices = @transform_0, window_bounds = array<i64: 8, 128>}, {pipeline_mode = #tpu.pipeline_mode<synchronous>, transform_indices = @transform_1, window_bounds = array<i64: 64, 8>}, {pipeline_mode = #tpu.pipeline_mode<synchronous>, transform_indices = @transform_2, window_bounds = array<i64: 64, 128>}, {pipeline_mode = #tpu.pipeline_mode<synchronous>, transform_indices = @transform_3, window_bounds = array<i64: 8, 64>}, {transform_indices = @transform_4, window_bounds = array<i64: 8, 128>}]} {
    %c0 = arith.constant 0 : index
    %c0_0 = arith.constant 0 : index
    %0 = vector.load %arg1[%c0, %c0_0] : memref<8x128xf32, #tpu.memory_space<vmem>>, vector<8x128xf32>
    %c0_1 = arith.constant 0 : index
    %c0_2 = arith.constant 0 : index
    %1 = vector.load %arg2[%c0_1, %c0_2] : memref<64x8xf32, #tpu.memory_space<vmem>>, vector<64x8xf32>
    %c0_3 = arith.constant 0 : index
    %c0_4 = arith.constant 0 : index
    %2 = vector.load %arg3[%c0_3, %c0_4] : memref<64x128xf32, #tpu.memory_space<vmem>>, vector<64x128xf32>
    %c0_5 = arith.constant 0 : index
    %c0_6 = arith.constant 0 : index
    %3 = vector.load %arg4[%c0_5, %c0_6] : memref<8x64xf32, #tpu.memory_space<vmem>>, vector<8x64xf32>
    %4 = vector.extract_strided_slice %2 {offsets = [0, 0], sizes = [64, 1], strides = [1, 1]} : vector<64x128xf32> to vector<64x1xf32>
    %5 = vector.extract_strided_slice %2 {offsets = [0, 1], sizes = [64, 1], strides = [1, 1]} : vector<64x128xf32> to vector<64x1xf32>
    %6 = vector.extract_strided_slice %2 {offsets = [0, 2], sizes = [64, 1], strides = [1, 1]} : vector<64x128xf32> to vector<64x1xf32>
    %7 = vector.extract_strided_slice %2 {offsets = [0, 3], sizes = [8, 1], strides = [1, 1]} : vector<64x128xf32> to vector<8x1xf32>
    %cst = arith.constant dense<0.000000e+00> : vector<64x128xf32>
    %8 = tpu.matmul %1, %0, %cst {dimension_numbers = #tpu.dot_dimension_numbers<[1], [0], [0], [1], [0, 0, 1, 1], [], []>} : vector<64x8xf32>, vector<8x128xf32>, vector<64x128xf32> -> vector<64x128xf32>
    %9 = vector.broadcast %4 : vector<64x1xf32> to vector<64x128xf32>
    %10 = arith.addf %8, %9 : vector<64x128xf32>
    %11 = vector.extract_strided_slice %10 {offsets = [0, 0], sizes = [32, 128], strides = [1, 1]} : vector<64x128xf32> to vector<32x128xf32>
    %12 = vector.extract_strided_slice %10 {offsets = [32, 0], sizes = [32, 128], strides = [1, 1]} : vector<64x128xf32> to vector<32x128xf32>
    %cst_7 = arith.constant dense<0.000000e+00> : vector<128xf32>
    %13 = vector.multi_reduction <add>, %11, %cst_7 [0] : vector<32x128xf32> to vector<128xf32>
    %14 = vector.shape_cast %13 : vector<128xf32> to vector<1x128xf32>
    %cst_8 = arith.constant 3.125000e-02 : f32
    %15 = vector.broadcast %cst_8 : f32 to vector<1x128xf32>
    %16 = arith.mulf %14, %15 : vector<1x128xf32>
    %cst_9 = arith.constant dense<0.000000e+00> : vector<128xf32>
    %17 = vector.multi_reduction <add>, %12, %cst_9 [0] : vector<32x128xf32> to vector<128xf32>
    %18 = vector.shape_cast %17 : vector<128xf32> to vector<1x128xf32>
    %cst_10 = arith.constant 3.125000e-02 : f32
    %19 = vector.broadcast %cst_10 : f32 to vector<1x128xf32>
    %20 = arith.mulf %18, %19 : vector<1x128xf32>
    %21 = vector.broadcast %16 : vector<1x128xf32> to vector<32x128xf32>
    %22 = arith.subf %11, %21 : vector<32x128xf32>
    %23 = vector.broadcast %20 : vector<1x128xf32> to vector<32x128xf32>
    %24 = arith.subf %12, %23 : vector<32x128xf32>
    %25 = arith.mulf %22, %22 : vector<32x128xf32>
    %cst_11 = arith.constant dense<0.000000e+00> : vector<128xf32>
    %26 = vector.multi_reduction <add>, %25, %cst_11 [0] : vector<32x128xf32> to vector<128xf32>
    %27 = vector.shape_cast %26 : vector<128xf32> to vector<1x128xf32>
    %cst_12 = arith.constant 3.125000e-02 : f32
    %28 = vector.broadcast %cst_12 : f32 to vector<1x128xf32>
    %29 = arith.mulf %27, %28 : vector<1x128xf32>
    %30 = arith.mulf %24, %24 : vector<32x128xf32>
    %cst_13 = arith.constant dense<0.000000e+00> : vector<128xf32>
    %31 = vector.multi_reduction <add>, %30, %cst_13 [0] : vector<32x128xf32> to vector<128xf32>
    %32 = vector.shape_cast %31 : vector<128xf32> to vector<1x128xf32>
    %cst_14 = arith.constant 3.125000e-02 : f32
    %33 = vector.broadcast %cst_14 : f32 to vector<1x128xf32>
    %34 = arith.mulf %32, %33 : vector<1x128xf32>
    %cst_15 = arith.constant 9.99999974E-6 : f32
    %35 = vector.broadcast %cst_15 : f32 to vector<1x128xf32>
    %36 = arith.addf %29, %35 : vector<1x128xf32>
    %37 = math.rsqrt %36 : vector<1x128xf32>
    %38 = vector.broadcast %37 : vector<1x128xf32> to vector<32x128xf32>
    %39 = arith.mulf %22, %38 : vector<32x128xf32>
    %cst_16 = arith.constant 9.99999974E-6 : f32
    %40 = vector.broadcast %cst_16 : f32 to vector<1x128xf32>
    %41 = arith.addf %34, %40 : vector<1x128xf32>
    %42 = math.rsqrt %41 : vector<1x128xf32>
    %43 = vector.broadcast %42 : vector<1x128xf32> to vector<32x128xf32>
    %44 = arith.mulf %24, %43 : vector<32x128xf32>
    %45 = tpu.concatenate %39, %44 in 0 : vector<32x128xf32>, vector<32x128xf32> -> vector<64x128xf32>
    %46 = vector.broadcast %5 : vector<64x1xf32> to vector<64x128xf32>
    %47 = arith.mulf %45, %46 : vector<64x128xf32>
    %48 = vector.broadcast %6 : vector<64x1xf32> to vector<64x128xf32>
    %49 = arith.addf %47, %48 : vector<64x128xf32>
    %cst_17 = arith.constant 0.000000e+00 : f32
    %50 = vector.broadcast %cst_17 : f32 to vector<64x128xf32>
    %51 = arith.maximumf %49, %50 : vector<64x128xf32>
    %cst_18 = arith.constant dense<0.000000e+00> : vector<8x128xf32>
    %52 = tpu.matmul %3, %51, %cst_18 {dimension_numbers = #tpu.dot_dimension_numbers<[1], [0], [0], [1], [0, 0, 1, 1], [], []>} : vector<8x64xf32>, vector<64x128xf32>, vector<8x128xf32> -> vector<8x128xf32>
    %53 = vector.broadcast %7 : vector<8x1xf32> to vector<8x128xf32>
    %54 = arith.addf %52, %53 : vector<8x128xf32>
    %55 = vector.extract_strided_slice %54 {offsets = [0, 0], sizes = [4, 128], strides = [1, 1]} : vector<8x128xf32> to vector<4x128xf32>
    %cst_19 = arith.constant dense<0xFF800000> : vector<128xf32>
    %56 = vector.multi_reduction <maximumf>, %55, %cst_19 [0] : vector<4x128xf32> to vector<128xf32>
    %57 = vector.shape_cast %56 : vector<128xf32> to vector<1x128xf32>
    %58 = vector.broadcast %57 : vector<1x128xf32> to vector<4x128xf32>
    %59 = arith.subf %55, %58 : vector<4x128xf32>
    %60 = math.exp %59 : vector<4x128xf32>
    %cst_20 = arith.constant dense<0.000000e+00> : vector<128xf32>
    %61 = vector.multi_reduction <add>, %60, %cst_20 [0] : vector<4x128xf32> to vector<128xf32>
    %62 = vector.shape_cast %61 : vector<128xf32> to vector<1x128xf32>
    %63 = tpu.reciprocal %62 : vector<1x128xf32> -> vector<1x128xf32>
    %64 = vector.broadcast %63 : vector<1x128xf32> to vector<4x128xf32>
    %65 = arith.mulf %60, %64 : vector<4x128xf32>
    %66 = vector.extract_strided_slice %54 {offsets = [4, 0], sizes = [4, 128], strides = [1, 1]} : vector<8x128xf32> to vector<4x128xf32>
    %67 = tpu.concatenate %65, %66 in 0 : vector<4x128xf32>, vector<4x128xf32> -> vector<8x128xf32>
    %c0_21 = arith.constant 0 : index
    %c0_22 = arith.constant 0 : index
    %68 = vector.load %arg5[%c0_21, %c0_22] : memref<8x128xf32, #tpu.memory_space<vmem>>, vector<8x128xf32>
    tpu.vector_store %arg5[%c0_21, %c0_22], %67 {strides = array<i32>} : memref<8x128xf32, #tpu.memory_space<vmem>>, vector<8x128xf32>,
    return
  }
  func.func @transform_0(%arg0: i32) -> (i32, i32) {
    %c0_i32 = arith.constant 0 : i32
    %c0_i32_0 = arith.constant 0 : i32
    return %c0_i32, %arg0 : i32, i32
  }
  func.func @transform_1(%arg0: i32) -> (i32, i32) {
    %c0_i32 = arith.constant 0 : i32
    %c0_i32_0 = arith.constant 0 : i32
    %c0_i32_1 = arith.constant 0 : i32
    return %c0_i32, %c0_i32_0 : i32, i32
  }
  func.func @transform_2(%arg0: i32) -> (i32, i32) {
    %c0_i32 = arith.constant 0 : i32
    %c0_i32_0 = arith.constant 0 : i32
    %c0_i32_1 = arith.constant 0 : i32
    return %c0_i32, %c0_i32_0 : i32, i32
  }
  func.func @transform_3(%arg0: i32) -> (i32, i32) {
    %c0_i32 = arith.constant 0 : i32
    %c0_i32_0 = arith.constant 0 : i32
    %c0_i32_1 = arith.constant 0 : i32
    return %c0_i32, %c0_i32_0 : i32, i32
  }
  func.func @transform_4(%arg0: i32) -> (i32, i32) {
    %c0_i32 = arith.constant 0 : i32
    %c0_i32_0 = arith.constant 0 : i32
    return %c0_i32, %arg0 : i32, i32
  }
}

</mosaic_0001>

<bundles_post_ra>
// kernel: tpu_custom_call.1
= control target key start
LH: loop header
LB: loop body
LE: loop exit
PB: predicated region body
PF: predicated region fallthrough
CT: control target
= control target key end

     0   :  { %9 = vsyncpa [#allocation3], 0  ;;  %s647_s0 = inlined_call_operand.vmem [shape: f32[8,128], index: 0, kind: input, shape index: {}]   ;;  %s648_s1 = inlined_call_operand.vmem [shape: f32[64,8], index: 1, kind: input, shape index: {}]   ;;  %s649_s2 = inlined_call_operand.vmem [shape: f32[64,128], index: 2, kind: input, shape index: {}]   ;;  %s650_s3 = inlined_call_operand.hbm [shape: f32[8,64], index: 3, kind: input, shape index: {}]   ;;  %s651_s4 = inlined_call_operand.hbm [shape: f32[8,128], index: 4, kind: output, shape index: {}]  }
   0x1   :  { %10 = vsyncpa [#allocation4], 0  ;;  %s22_s17 = sshll.u32 %s650_s3, 4  ;;  %s501_s18 = smov [#allocation2]   ;;  %s23_s17 = int_to_ptr.hbm [resolvable:$true] %s22_s17 }
   0x2   :  { %s24_s19 = sshll.u32 %s501_s18, 4  ;;  %s25_s19 = int_to_ptr.vmem [resolvable:$true] %s24_s19 }
   0x3   :  { %27 = dma.hbm_to_vmem [thread:$0]  %s23_s17, 128, %s25_s19, [#allocation3]  }
   0x4   :  { %497 = dma.done.wait [#allocation3], 128  }
   0x5   :  { %498 = vsyncadd [#allocation3], 4294967168  ;;  %v502_v0 = vmov 0   ;;  %vm90_vm0 = vcmask 64512   ;;  %v32_v1 = vld [vmem:[%s647_s0] sm:$0xff]  ;;  %v36_v3 = vld [vmem:[%s648_s1 + $0x18] sm:$0xff] }
   0x6   :  { %428 = vset.pattern.permute.xlu1 %v502_v0  ;;  %427 = vset.pattern.permute.xlu0 %v502_v0  ;;  %v33_v2 = vld [vmem:[%s648_s1] sm:$0xff]  ;;  %v47_v4 = vld [vmem:[%s649_s2 + $0x30] sm:$0xff]  ;;  %v34_v8 = vld [vmem:[%s648_s1 + $0x8] sm:$0xff]  ;;  %v503_v18 = vmov 1   ;;  %v504_v19 = vmov 2   ;;  %vm334_vm7 = vcmask 523264  }
   0x7   :  { %429 = vset.pattern.permute.xlu2 %v502_v0  ;;  %130 = vmatpush.msra.mxu0 %v32_v1  ;;  %v39_v5 = vld [vmem:[%s648_s1 + $0x30] sm:$0xff]  ;;  %v45_v6 = vld [vmem:[%s649_s2 + $0x20] sm:$0xff]  ;;  %v48_v10 = vld [vmem:[%s649_s2 + $0x38] sm:$0xff]  ;;  %vm358_vm8 = vcmask 1043456   ;;  %s400_s27 = sshll.u32 %s651_s4, 4  ;;  %s401_s27 = int_to_ptr.hbm [resolvable:$true] %s400_s27 }
   0x8   :  { %419 = vmatpush.msra.mxu2 %v32_v1  ;;  %410 = vmatmul.msk.f32.vlgmr.msra.gmra.mxu0 %vm90_vm0, %v33_v2  ;;  %v559_v7 = vld [vmem:[%s649_s2] sm:$0xff]  ;;  %v40_v11 = vld [vmem:[%s648_s1 + $0x38] sm:$0xff]  ;;  %v46_v12 = vld [vmem:[%s649_s2 + $0x28] sm:$0xff] }
   0x9   :  { %413 = vmatmul.msk.f32.vlgmr.msra.gmra.mxu2 %vm90_vm0, %v36_v3  ;;  %82 = vperm.xlu1 %428, %v47_v4   ;;  %v37_v9 = vld [vmem:[%s648_s1 + $0x20] sm:$0xff]  ;;  %v42_v13 = vld [vmem:[%s649_s2 + $0x8] sm:$0xff]  ;;  %v35_v14 = vld [vmem:[%s648_s1 + $0x10] sm:$0xff] }
   0xa   :  { %420 = vmatpush.msra.mxu3 %v32_v1  ;;  %72 = vperm.xlu0 %427, %v45_v6   ;;  %v38_v15 = vld [vmem:[%s648_s1 + $0x28] sm:$0xff]  ;;  %v44_v16 = vld [vmem:[%s649_s2 + $0x18] sm:$0xff]  ;;  %v43_v17 = vld [vmem:[%s649_s2 + $0x10] sm:$0xff]  ;;  %s506_s1 = smov [#allocation5]  }
   0xb   :  { %416 = vmatmul.msk.f32.vlgmr.msra.gmra.mxu3 %vm90_vm0, %v39_v5  ;;  %52 = vperm.xlu2 %429, %v559_v7   ;;  %s398_s2 = sshll.u32 %s506_s1, 4  ;;  %s399_s2 = int_to_ptr.vmem [resolvable:$true] %s398_s2 }
  0x10   :  { %411 = vmatmul.msk.f32.gmra.mxu0 %vm90_vm0, %v34_v8 }
  0x11   :  { %414 = vmatmul.msk.f32.gmra.mxu2 %vm90_vm0, %v37_v9  ;;  %87 = vperm.xlu1 %428, %v48_v10  }
  0x12   :  { %77 = vperm.xlu0 %427, %v46_v12  }
  0x13   :  { %417 = vmatmul.msk.f32.gmra.mxu3 %vm90_vm0, %v40_v11  ;;  %57 = vperm.xlu2 %429, %v42_v13  }
  0x18   :  { %412 = vmatmul.msk.f32.gmra.mxu0 %vm90_vm0, %v35_v14 }
  0x19   :  { %415 = vmatmul.msk.f32.gmra.mxu2 %vm90_vm0, %v38_v15  ;;  %67 = vperm.xlu1 %428, %v44_v16  }
  0x1a   :  { %62 = vperm.xlu0 %427, %v43_v17  }
  0x1b   :  { %430 = vset.pattern.permute.xlu2 %v503_v18 }
  0x1c   :  { %271 = vperm.xlu2 %430, %v48_v10  }
  0x21   :  { %432 = vset.pattern.permute.xlu1 %v504_v19 }
  0x22   :  { %311 = vperm.xlu1 %432, %v48_v10   ;;  %431 = vset.pattern.permute.xlu0 %v503_v18 }
  0x23   :  { %267 = vperm.xlu0 %431, %v47_v4  }
  0x24   :  { %263 = vperm.xlu2 %430, %v46_v12  }
  0x2a   :  { %307 = vperm.xlu1 %432, %v47_v4  }
  0x2b   :  { %433 = vset.pattern.permute.xlu0 %v504_v19 }
  0x2c   :  { %303 = vperm.xlu0 %433, %v46_v12   ;;  %259 = vperm.xlu2 %430, %v45_v6  }
  0x32   :  { %434 = vset.pattern.permute.xlu1 %v503_v18 }
  0x33   :  { %255 = vperm.xlu1 %434, %v44_v16  }
  0x34   :  { %436 = vset.pattern.permute.xlu0 %v503_v18  ;;  %435 = vset.pattern.permute.xlu2 %v504_v19 }
  0x35   :  { %247 = vperm.xlu0 %436, %v42_v13   ;;  %299 = vperm.xlu2 %435, %v45_v6  }
  0x3b   :  { %251 = vperm.xlu1 %434, %v43_v17  }
  0x3d   :  { %295 = vperm.xlu2 %435, %v44_v16  }
  0x43   :  { %437 = vset.pattern.permute.xlu1 %v504_v19 }
  0x44   :  { %291 = vperm.xlu1 %437, %v43_v17  }
  0x45   :  { %438 = vset.pattern.permute.xlu2 %v503_v18 }
  0x46   :  { %243 = vperm.xlu2 %438, %v559_v7  }
  0x4c   :  { %287 = vperm.xlu1 %437, %v42_v13  }
  0x4e   :  { %439 = vset.pattern.permute.xlu2 %v504_v19 }
  0x4f   :  { %283 = vperm.xlu2 %439, %v559_v7  }
  0x65   :  { %v53_v22 = vpop.permute.xlu2 %52 }
  0x6d   :  { %v58_v28 = vpop.permute.xlu2 %57 }
  0x76   :  { %v613_v8 = vpop.permute.xlu2 %271 }
  0x7b   :  { %v83_v20 = vpop.permute.xlu1 %82 }
  0x7c   :  { %v73_v21 = vpop.permute.xlu0 %72 }
  0x83   :  { %v88_v24 = vpop.permute.xlu1 %87 }
  0x84   :  { %v78_v25 = vpop.permute.xlu0 %77 }
  0x85   :  { %v132_v23 = vpop.f32.mrf.mxu0 }
  0x86   :  { %v133_v29 = vadd.f32 %v132_v23, %v53_v22 }
  0x8b   :  { %v68_v33 = vpop.permute.xlu1 %67 }
  0x8c   :  { %v141_v26 = vpop.f32.mrf.mxu2  ;;  %v63_v35 = vpop.permute.xlu0 %62 }
  0x8d   :  { %v135_v27 = vpop.f32.mrf.mxu0  ;;  %v142_v38 = vadd.f32 %v141_v26, %v68_v33  ;;  %v264_v26 = vpop.permute.xlu2 %263 }
  0x8e   :  { %v136_v30 = vadd.f32 %v135_v27, %v58_v28  ;;  %v150_v31 = vpop.f32.mrf.mxu3 }
  0x8f   :  { %v151_v46 = vadd.f32 %v150_v31, %v83_v20 }
  0x90   :  { %v156_v34 = vadd.f32 %v136_v30, %v133_v29 }
  0x94   :  { %v144_v32 = vpop.f32.mrf.mxu2  ;;  %v629_v22 = vpop.permute.xlu1 %311 }
  0x95   :  { %v138_v36 = vpop.f32.mrf.mxu0  ;;  %v145_v42 = vadd.f32 %v144_v32, %v73_v21 }
  0x96   :  { %v139_v37 = vadd.f32 %v138_v36, %v63_v35  ;;  %v153_v45 = vpop.f32.mrf.mxu3 }
  0x97   :  { %v154_v50 = vadd.f32 %v153_v45, %v88_v24 }
  0x98   :  { %v157_v39 = vadd.f32 %v156_v34, %v139_v37 }
  0x9a   :  { %v158_v40 = vadd.f32 %v157_v39, %v142_v38 }
  0x9c   :  { %v147_v41 = vpop.f32.mrf.mxu2  ;;  %v159_v43 = vrot.slane %v158_v40, 4  ;;  %v308_v35 = vpop.permute.xlu1 %307 }
  0x9d   :  { %v148_v44 = vadd.f32 %v147_v41, %v78_v25 }
  0x9e   :  { %v160_v47 = vadd.f32 %v159_v43, %v158_v40 }
  0x9f   :  { %v166_v48 = vadd.f32 %v148_v44, %v145_v42 }
  0xa0   :  { %v161_v49 = vrot.slane %v160_v47, 2 }
  0xa1   :  { %v167_v51 = vadd.f32 %v166_v48, %v151_v46 }
  0xa2   :  { %v162_v52 = vadd.f32 %v161_v49, %v160_v47 }
  0xa3   :  { %v168_v53 = vadd.f32 %v167_v51, %v154_v50 }
  0xa4   :  { %v163_v54 = vrot.slane %v162_v52, 1 }
  0xa5   :  { %v169_v55 = vrot.slane %v168_v53, 4  ;;  %v256_v45 = vpop.permute.xlu1 %255 }
  0xa6   :  { %v164_v56 = vadd.f32 %v163_v54, %v162_v52 }
  0xa7   :  { %v170_v57 = vadd.f32 %v169_v55, %v168_v53 }
  0xa8   :  { %v165_v58 = vmul.f32 0.03125, %v164_v56  ;;  %v505_v56 = vmov 3  }
  0xa9   :  { %v171_v59 = vrot.slane %v170_v57, 2  ;;  %440 = vset.pattern.permute.xlu0 %v505_v56 }
  0xaa   :  { %v599_v60 = vsub.f32 %v133_v29, %v165_v58  ;;  %v601_v61 = vsub.f32 %v136_v30, %v165_v58  ;;  %v603_v62 = vsub.f32 %v139_v37, %v165_v58  ;;  %v609_v3 = vsub.f32 %v142_v38, %v165_v58  ;;  %v260_v38 = vpop.permute.xlu2 %259  ;;  %331 = vperm.xlu0 %440, %v559_v7  }
  0xab   :  { %v172_v63 = vadd.f32 %v171_v59, %v170_v57 }
  0xac   :  { %v184_v0 = vmul.f32 %v599_v60, %v599_v60  ;;  %v185_v1 = vmul.f32 %v601_v61, %v601_v61  ;;  %v186_v4 = vmul.f32 %v603_v62, %v603_v62  ;;  %v187_v11 = vmul.f32 %v609_v3, %v609_v3 }
  0xad   :  { %v173_v2 = vrot.slane %v172_v63, 1  ;;  %v252_v55 = vpop.permute.xlu1 %251 }
  0xae   :  { %v188_v5 = vadd.f32 %v185_v1, %v184_v0 }
  0xaf   :  { %v174_v6 = vadd.f32 %v173_v2, %v172_v63 }
  0xb0   :  { %v189_v9 = vadd.f32 %v188_v5, %v186_v4 }
  0xb1   :  { %v175_v10 = vmul.f32 0.03125, %v174_v6 }
  0xb2   :  { %v190_v15 = vadd.f32 %v189_v9, %v187_v11  ;;  %v300_v47 = vpop.permute.xlu2 %299 }
  0xb3   :  { %v617_v12 = vsub.f32 %v145_v42, %v175_v10  ;;  %v619_v13 = vsub.f32 %v148_v44, %v175_v10  ;;  %v621_v14 = vsub.f32 %v151_v46, %v175_v10  ;;  %v183_v18 = vsub.f32 %v154_v50, %v175_v10  ;;  %v268_v50 = vpop.permute.xlu0 %267 }
  0xb4   :  { %v191_v19 = vrot.slane %v190_v15, 4 }
  0xb5   :  { %v198_v16 = vmul.f32 %v617_v12, %v617_v12  ;;  %v199_v17 = vmul.f32 %v619_v13, %v619_v13  ;;  %v200_v20 = vmul.f32 %v621_v14, %v621_v14  ;;  %v201_v25 = vmul.f32 %v183_v18, %v183_v18 }
  0xb6   :  { %v192_v23 = vadd.f32 %v191_v19, %v190_v15  ;;  %v292_v7 = vpop.permute.xlu1 %291 }
  0xb7   :  { %v202_v21 = vadd.f32 %v199_v17, %v198_v16 }
  0xb8   :  { %v193_v27 = vrot.slane %v192_v23, 2 }
  0xb9   :  { %v203_v24 = vadd.f32 %v202_v21, %v200_v20 }
  0xba   :  { %v194_v29 = vadd.f32 %v193_v27, %v192_v23  ;;  %v296_v58 = vpop.permute.xlu2 %295 }
  0xbb   :  { %v204_v28 = vadd.f32 %v203_v24, %v201_v25  ;;  %v304_v1 = vpop.permute.xlu0 %303 }
  0xbc   :  { %v195_v31 = vrot.slane %v194_v29, 1 }
  0xbd   :  { %v205_v30 = vrot.slane %v204_v28, 4 }
  0xbe   :  { %v196_v33 = vadd.f32 %v195_v31, %v194_v29 }
  0xbf   :  { %v206_v32 = vadd.f32 %v205_v30, %v204_v28 }
  0xc0   :  { %v197_v36 = vmul.f32 0.03125, %v196_v33 }
  0xc1   :  { %v207_v34 = vrot.slane %v206_v32, 2 }
  0xc2   :  { %v212_v39 = vadd.f32 1e-05, %v197_v36  ;;  %v244_v19 = vpop.permute.xlu2 %243 }
  0xc3   :  { %v208_v37 = vadd.f32 %v207_v34, %v206_v32 }
  0xc4   :  { %441 = vrsqrt.f32 %v212_v39  ;;  %vm219_vm3 = vweird.f32 %v212_v39 }
  0xc5   :  { %v209_v40 = vrot.slane %v208_v37, 1 }
  0xc7   :  { %v210_v41 = vadd.f32 %v209_v40, %v208_v37 }
  0xc9   :  { %v211_v42 = vmul.f32 0.03125, %v210_v41 }
  0xca   :  { %v442_v44 = vpop.eup %441  ;;  %v284_v33 = vpop.permute.xlu2 %283 }
  0xcb   :  { %v227_v43 = vadd.f32 1e-05, %v211_v42  ;;  %v214_v46 = vmul.f32 %v442_v44, %v212_v39  ;;  %vm220_vm1 = vweird.f32 %v442_v44 }
  0xcc   :  { %vm221_vm5 = vmor %vm219_vm3, %vm220_vm1 }
  0xcd   :  { %443 = vrsqrt.f32 %v227_v43  ;;  %v215_v48 = vmul.f32 %v442_v44, %v214_v46  ;;  %vm234_vm4 = vweird.f32 %v227_v43 }
  0xcf   :  { %v216_v49 = vmul.f32 0.5, %v215_v48 }
  0xd1   :  { %v217_v54 = vsub.f32 1.5, %v216_v49 }
  0xd3   :  { %v444_v51 = vpop.eup %443  ;;  %v218_v63 = vmul.f32 %v442_v44, %v217_v54 }
  0xd4   :  { %v229_v52 = vmul.f32 %v444_v51, %v227_v43  ;;  %vm235_vm2 = vweird.f32 %v444_v51 }
  0xd5   :  { %vm236_vm6 = vmor %vm234_vm4, %vm235_vm2  ;;  %v222_v4 = vsel %vm221_vm5, %v442_v44, %v218_v63 }
  0xd6   :  { %v230_v53 = vmul.f32 %v444_v51, %v229_v52  ;;  %v226_v16 = vmul.f32 %v222_v4, %v609_v3  ;;  %v225_v21 = vmul.f32 %v222_v4, %v603_v62  ;;  %v288_v62 = vpop.permute.xlu1 %287 }
  0xd8   :  { %v231_v57 = vmul.f32 0.5, %v230_v53  ;;  %v277_v24 = vmul.f32 %v256_v45, %v226_v16  ;;  %v276_v28 = vmul.f32 %v252_v55, %v225_v21 }
  0xda   :  { %v232_v59 = vsub.f32 1.5, %v231_v57 }
  0xdc   :  { %v233_v0 = vmul.f32 %v444_v51, %v232_v59 }
  0xde   :  { %v237_v2 = vsel %vm236_vm6, %v444_v51, %v233_v0 }
  0xdf   :  { %v241_v5 = vmul.f32 %v237_v2, %v183_v18  ;;  %v239_v6 = vmul.f32 %v237_v2, %v619_v13  ;;  %v238_v9 = vmul.f32 %v237_v2, %v617_v12  ;;  %v240_v10 = vmul.f32 %v237_v2, %v621_v14  ;;  %v248_v14 = vpop.permute.xlu0 %247 }
  0xe0   :  { %v224_v12 = vmul.f32 %v222_v4, %v601_v61 }
  0xe1   :  { %v281_v11 = vmul.f32 %v613_v8, %v241_v5  ;;  %v279_v15 = vmul.f32 %v264_v26, %v239_v6  ;;  %v280_v17 = vmul.f32 %v268_v50, %v240_v10  ;;  %v278_v20 = vmul.f32 %v260_v38, %v238_v9  ;;  %v49_v38 = vld [vmem:[#allocation2] sm:$0xff] }
  0xe2   :  { %v223_v8 = vmul.f32 %v222_v4, %v599_v60  ;;  %v317_v26 = vadd.f32 %v296_v58, %v277_v24  ;;  %v275_v30 = vmul.f32 %v248_v14, %v224_v12 }
  0xe3   :  { %v321_v23 = vadd.f32 %v629_v22, %v281_v11  ;;  %v320_v18 = vadd.f32 %v308_v35, %v280_v17  ;;  %v319_v13 = vadd.f32 %v304_v1, %v279_v15  ;;  %v318_v27 = vadd.f32 %v300_v47, %v278_v20 }
  0xe4   :  { %v316_v22 = vadd.f32 %v292_v7, %v276_v28  ;;  %v274_v32 = vmul.f32 %v244_v19, %v223_v8  ;;  %v325_v34 = vmax.f32 %v317_v26, 0.0  ;;  %v315_v61 = vadd.f32 %v288_v62, %v275_v30 }
  0xe5   :  { %v329_v25 = vmax.f32 %v321_v23, 0.0  ;;  %v328_v3 = vmax.f32 %v320_v18, 0.0  ;;  %v327_v29 = vmax.f32 %v319_v13, 0.0  ;;  %v326_v31 = vmax.f32 %v318_v27, 0.0 }
  0xe6   :  { %v324_v35 = vmax.f32 %v316_v22, 0.0  ;;  %v314_v36 = vadd.f32 %v284_v33, %v274_v32  ;;  %v323_v37 = vmax.f32 %v315_v61, 0.0 }
  0xe7   :  { %346 = vmatpush.msra.mxu1 %v329_v25 }
  0xe8   :  { %v322_v60 = vmax.f32 %v314_v36, 0.0 }
  0xe9   :  { %347 = vmatpush.msra.mxu1 %v328_v3 }
  0xeb   :  { %348 = vmatpush.msra.mxu1 %v327_v29 }
  0xed   :  { %349 = vmatpush.msra.mxu1 %v326_v31 }
  0xef   :  { %350 = vmatpush.msra.mxu1 %v325_v34 }
  0xf1   :  { %351 = vmatpush.msra.mxu1 %v324_v35 }
  0xf3   :  { %352 = vmatpush.msra.mxu1 %v323_v37 }
  0xf5   :  { %353 = vmatpush.msra.mxu1 %v322_v60 }
  0xf6   :  { %418 = vmatmul.msk.f32.vlgmr.msra.gmra.mxu1 %vm334_vm7, %v49_v38 }
 0x11c   :  { %v332_v39 = vpop.permute.xlu0 %331 }
 0x173   :  { %v355_v40 = vpop.f32.mrf.mxu1 }
 0x174   :  { %v356_v41 = vadd.f32 %v355_v40, %v332_v39 }
 0x176   :  { %v359_v42 = vsel %vm358_vm8, %v356_v41, -inf }
 0x177   :  { %v360_v43 = vrot.slane %v359_v42, 4 }
 0x179   :  { %v361_v44 = vmax.f32 %v359_v42, %v360_v43 }
 0x17b   :  { %v362_v45 = vrot.slane %v361_v44, 2 }
 0x17d   :  { %v363_v46 = vmax.f32 %v361_v44, %v362_v45 }
 0x17f   :  { %v364_v47 = vrot.slane %v363_v46, 1 }
 0x181   :  { %v365_v48 = vmax.f32 %v363_v46, %v364_v47 }
 0x183   :  { %v366_v49 = vsub.f32 %v356_v41, %v365_v48 }
 0x185   :  { %v367_v50 = vmul.f32 1.442695, %v366_v49 }
 0x187   :  { %445 = vpow2.f32 %v367_v50 }
 0x18d   :  { %v446_v51 = vpop.eup %445 }
 0x18e   :  { %v369_v52 = vsel %vm358_vm8, %v446_v51, 0.0 }
 0x18f   :  { %v370_v53 = vrot.slane %v369_v52, 4 }
 0x191   :  { %v371_v54 = vadd.f32 %v370_v53, %v369_v52 }
 0x193   :  { %v372_v55 = vrot.slane %v371_v54, 2 }
 0x195   :  { %v373_v56 = vadd.f32 %v372_v55, %v371_v54 }
 0x197   :  { %v374_v57 = vrot.slane %v373_v56, 1 }
 0x199   :  { %v375_v58 = vadd.f32 %v374_v57, %v373_v56 }
 0x19b   :  { %447 = vrcp.f32 %v375_v58  ;;  %v387_v1 = vand.u32 2147483648, %v375_v58  ;;  %v385_v4 = vand.u32 2147483647, %v375_v58  ;;  %vm381_vm10 = vweird.f32 %v375_v58 }
 0x19d   :  { %v388_v6 = vor.u32 1.1754944e-38, %v387_v1  ;;  %vm386_vm12 = vcmp.eq.f32.partialorder %v385_v4, 8.507059e+37 }
 0x1a1   :  { %v448_v59 = vpop.eup %447 }
 0x1a2   :  { %v377_v63 = vmul.f32 %v448_v59, %v375_v58  ;;  %vm382_vm9 = vweird.f32 %v448_v59 }
 0x1a3   :  { %vm383_vm11 = vmor %vm381_vm10, %vm382_vm9 }
 0x1a4   :  { %v378_v0 = vsub.f32 1.0, %v377_v63 }
 0x1a6   :  { %v379_v2 = vmul.f32 %v448_v59, %v378_v0 }
 0x1a8   :  { %v380_v5 = vadd.f32 %v448_v59, %v379_v2 }
 0x1aa   :  { %v384_v9 = vsel %vm383_vm11, %v448_v59, %v380_v5 }
 0x1ab   :  { %v389_v10 = vsel %vm386_vm12, %v388_v6, %v384_v9 }
 0x1ac   :  { %v390_v7 = vmul.f32 %v446_v51, %v389_v10 }
 0x1ae   :  { %v391_v11 = vsel %vm358_vm8, %v390_v7, %v356_v41 }
 0x1af   :  { %392 = vst [vmem:[#allocation5] sm:$0xff] %v391_v11 }
 0x1b0   :  { %403 = dma.vmem_to_hbm [thread:$0]  %s399_s2, 128, %s401_s27, [#allocation4]  }
 0x1b1   :  { %499 = dma.done.wait [#allocation4], 128  }
 0x1b2   :  { %500 = vsyncadd [#allocation4], 4294967168 }
 0x1b3   :  { %408 = vsyncpa [#allocation3], 1 }
 0x1b4   :  { %409 = vsyncpa [#allocation4], 1 }

</bundles_post_ra>
